<compile_context>
chip_gen: v6e
topology: v6e:2x2x1
jax: 0.10.0
libtpu: 0.0.40
codegen_flags: <defaults>
</compile_context>

<pallas_src>
import functools

import jax
import jax.numpy as jnp
from jax import lax
from jax.experimental import pallas as pl
from jax.experimental.pallas import tpu as pltpu


# ---------------------------------------------------------------------------
# Kernels
# ---------------------------------------------------------------------------
def _fused_train_kernel(eps, momentum, inv_n, inv_nm1, pad_count,
                        x_ref, w_ref, b_ref, rm_ref, rv_ref,
                        o_ref, nrm_ref, nrv_ref):
    """Resident-x training kernel: exact two-pass stats + EMA + normalize.

    x_ref/o_ref: whole (rows, lane_w) slab in VMEM (1 HBM read + 1 write).
    w/b/rm/rv:   (1,) f32 scalars in SMEM.
    nrm/nrv:     (1,) f32 SMEM outputs (updated running stats).
    pad_count:   number of zero-padded elements appended to x (compile-time).
    """
    x = x_ref[...].astype(jnp.float32)
    mean = jnp.sum(x) * inv_n                      # padded zeros add 0; inv_n uses true n
    centered = x - mean
    # padded zeros contribute (+mean^2) each to the centered sum-of-squares.
    csq = jnp.maximum(jnp.sum(centered * centered) - pad_count * mean * mean, 0.0)
    biased_var = csq * inv_n
    unbiased_var = csq * inv_nm1

    inv_std = lax.rsqrt(biased_var + eps)
    scale = inv_std * w_ref[0]
    shift = b_ref[0] - mean * scale

    o_ref[...] = (x * scale + shift).astype(o_ref.dtype)
    nrm_ref[0] = (1.0 - momentum) * rm_ref[0] + momentum * mean
    nrv_ref[0] = (1.0 - momentum) * rv_ref[0] + momentum * unbiased_var


def _partial_stats_kernel(x_ref, part_ref):
    """Tiled pass 1: accumulate per-split partial [sum, sum(x^2)].

    x_ref:    (tile_sub, 8, lane_w) tile of the padded input.
    part_ref: (1, 2, 8, lane_w) f32 output block, resident across the
              "arbitrary" tile axis (accumulator pattern).  Only VALU adds per
              tile; the cross-lane reduce happens later in plain JAX.
    """
    t = pl.program_id(1)

    @pl.when(t == 0)
    def _():
        part_ref[...] = jnp.zeros_like(part_ref)

    x = x_ref[...].astype(jnp.float32)
    part_ref[0, 0] += jnp.sum(x, axis=0)
    part_ref[0, 1] += jnp.sum(x * x, axis=0)


def _normalize_kernel(x_ref, ss_ref, o_ref):
    """Elementwise: out = x * scale + shift (scale/shift from SMEM)."""
    x = x_ref[...].astype(jnp.float32)
    o_ref[...] = (x * ss_ref[0] + ss_ref[1]).astype(o_ref.dtype)


# ---------------------------------------------------------------------------
# Per-generation budgets & layout helpers
# ---------------------------------------------------------------------------
def _ceil_to(a, m):
    return ((a + m - 1) // m) * m


def _budgets():
    """Derive VMEM budgets from the chip generation (conservative fallback)."""
    cap = None
    try:
        cap = int(pltpu.get_tpu_info().vmem_capacity_bytes)
    except Exception:
        cap = None
    if cap is not None and cap >= 96 * 1024 * 1024:
        # v5e / v6e: 128 MiB physical VMEM.
        return {"vmem_limit": 64 << 20, "tile_bytes": 8 << 20,
                "fused_x_cap": 24 << 20, "fused_vmem_limit": 100 << 20}
    # v7x (64 MiB VMEM) or unknown -> conservative.
    # TODO(synk): fused_x_cap assumes the 1-step grid may still double-buffer;
    # raise toward 40-48 MiB (v5e/v6e) / 20-24 MiB (v7x) once confirmed.
    return {"vmem_limit": 40 << 20, "tile_bytes": 4 << 20,
            "fused_x_cap": 12 << 20, "fused_vmem_limit": 56 << 20}


def _lane_width(n):
    """Widest multiple-of-128 lane width dividing n (or pad to 128)."""
    for cand in (1024, 512, 256, 128):
        if n % cand == 0:
            return cand, 0
    return 128, _ceil_to(n, 128) - n


def _normalize_lane2d(x2d, scale, shift, out_dtype, tile_bytes, vmem_limit):
    """Tiled (or single-block) elementwise normalize of a lane-dense 2D slab."""
    R, W = x2d.shape
    itemsize = jnp.dtype(x2d.dtype).itemsize
    max_tile_r = max(8, (tile_bytes // (W * itemsize)) // 8 * 8)
    ss = jnp.stack([scale, shift]).astype(jnp.float32)

    if R <= max_tile_r:
        tile_r, r_p, x_in = R, R, x2d                 # whole slab, one block
    else:
        tile_r = max_tile_r
        r_p = _ceil_to(R, tile_r)
        x_in = x2d if r_p == R else jnp.pad(x2d, ((0, r_p - R), (0, 0)))

    out = pl.pallas_call(
        _normalize_kernel,
        grid=(r_p // tile_r,),
        in_specs=[pl.BlockSpec((tile_r, W), lambda i: (i, 0)),
                  pl.BlockSpec(memory_space=pltpu.MemorySpace.SMEM)],
        out_specs=pl.BlockSpec((tile_r, W), lambda i: (i, 0)),
        out_shape=jax.ShapeDtypeStruct((r_p, W), out_dtype),
        compiler_params=pltpu.CompilerParams(
            dimension_semantics=("parallel",),
            vmem_limit_bytes=int(vmem_limit)),
        cost_estimate=pl.CostEstimate(
            flops=int(2 * r_p * W), transcendentals=0,
            bytes_accessed=int(2 * r_p * W * itemsize)),
    )(x_in, ss)
    return out[:R] if r_p != R else out
    # TODO(synk): add input_output_aliases={0: 0} here when the caller donates x.


# ---------------------------------------------------------------------------
# Forward wrapper
# ---------------------------------------------------------------------------
def tensor_norm_forward(x, weight, bias, running_mean, running_var, *,
                        eps=1e-4, momentum=0.1, training=True,
                        max_fused_bytes=None, tile_bytes=None):
    """Pallas TensorNorm forward.  Returns (out, new_running_mean, new_running_var)."""
    orig_shape = x.shape
    n = int(x.size)
    itemsize = jnp.dtype(x.dtype).itemsize

    budget = _budgets()
    if max_fused_bytes is None:
        max_fused_bytes = budget["fused_x_cap"]
    if tile_bytes is None:
        tile_bytes = budget["tile_bytes"]
    vmem_limit = budget["vmem_limit"]

    # Lane-dense 2-D view (rows, lane_w); pad flat tail with zeros if needed.
    lane_w, pad0 = _lane_width(n)
    rows = (n + pad0) // lane_w
    flat = x.reshape(-1)
    if pad0:
        flat = jnp.pad(flat, (0, pad0))
    x2d = flat.reshape(rows, lane_w)
    bytes_x2d = rows * lane_w * itemsize

    w32 = weight.astype(jnp.float32).reshape(-1)
    b32 = bias.astype(jnp.float32).reshape(-1)
    rm32 = running_mean.astype(jnp.float32).reshape(-1)
    rv32 = running_var.astype(jnp.float32).reshape(-1)

    inv_n = 1.0 / float(n)
    inv_nm1 = 1.0 / float(max(n - 1, 1))
    smem = pl.BlockSpec(memory_space=pltpu.MemorySpace.SMEM)

    # ------------------------------- eval -------------------------------- #
    if not training:
        inv_std = lax.rsqrt(rv32[0] + jnp.float32(eps))
        scale = inv_std * w32[0]
        shift = b32[0] - rm32[0] * scale
        out2d = _normalize_lane2d(x2d, scale, shift, x.dtype, tile_bytes, vmem_limit)
        out = out2d.reshape(-1)[:n].reshape(orig_shape)
        return out, running_mean, running_var

    # --------------------- training: fused resident-x --------------------- #
    if bytes_x2d <= max_fused_bytes:
        kernel = functools.partial(_fused_train_kernel, float(eps), float(momentum),
                                   inv_n, inv_nm1, float(pad0))
        full = pl.BlockSpec((rows, lane_w), lambda i: (0, 0))
        out2d, new_rm, new_rv = pl.pallas_call(
            kernel,
            grid=(1,),
            in_specs=[full, smem, smem, smem, smem],
            out_specs=(full, smem, smem),
            out_shape=(jax.ShapeDtypeStruct((rows, lane_w), x.dtype),
                       jax.ShapeDtypeStruct((1,), jnp.float32),
                       jax.ShapeDtypeStruct((1,), jnp.float32)),
            compiler_params=pltpu.CompilerParams(
                dimension_semantics=("arbitrary",),
                vmem_limit_bytes=int(budget["fused_vmem_limit"])),
            cost_estimate=pl.CostEstimate(
                flops=int(6 * n), transcendentals=1,
                bytes_accessed=int(2 * bytes_x2d)),
        )(x2d, w32, b32, rm32, rv32)
        out = out2d.reshape(-1)[:n].reshape(orig_shape)
        return out, new_rm, new_rv
    # TODO(synk): a 2-phase grid (stream tiles into a persistent VMEM scratch,
    # then normalize from it) would additionally pipeline the fused path's DMAs.

    # ----------------- training: two-pass tiled (large x) ------------------ #
    max_tile_r = max(8, (tile_bytes // (lane_w * itemsize)) // 8 * 8)
    tile_r = min(max_tile_r, _ceil_to(rows, 8))          # multiple of 8
    tiles0 = _ceil_to(rows, tile_r) // tile_r
    splits = 2 if tiles0 >= 2 else 1                     # 2-TC sharding on v7x
    rows_p = _ceil_to(rows, tile_r * splits)
    tiles = rows_p // tile_r
    tps = tiles // splits
    tile_sub = tile_r // 8

    x2dp = x2d if rows_p == rows else jnp.pad(x2d, ((0, rows_p - rows), (0, 0)))
    x3d = x2dp.reshape(rows_p // 8, 8, lane_w)
    bytes_xp = rows_p * lane_w * itemsize

    # Pass 1: partial [sum, sum(x^2)] per split (VMEM-resident accumulator).
    part = pl.pallas_call(
        _partial_stats_kernel,
        grid=(splits, tps),
        in_specs=[pl.BlockSpec((tile_sub, 8, lane_w),
                               lambda c, t: (c * tps + t, 0, 0))],
        out_specs=pl.BlockSpec((1, 2, 8, lane_w), lambda c, t: (c, 0, 0, 0)),
        out_shape=jax.ShapeDtypeStruct((splits, 2, 8, lane_w), jnp.float32),
        compiler_params=pltpu.CompilerParams(
            dimension_semantics=("parallel", "arbitrary"),
            vmem_limit_bytes=int(vmem_limit)),
        cost_estimate=pl.CostEstimate(
            flops=int(3 * n), transcendentals=0, bytes_accessed=int(bytes_xp)),
    )(x3d)

    # Tiny combine + EMA + scale/shift in plain JAX (scalar work only).
    total_sum = jnp.sum(part[:, 0])
    total_ssq = jnp.sum(part[:, 1])
    mean = total_sum * inv_n
    biased_var = jnp.maximum(total_ssq * inv_n - mean * mean, 0.0)
    unbiased_var = jnp.maximum(total_ssq - total_sum * mean, 0.0) * inv_nm1
    inv_std = lax.rsqrt(biased_var + jnp.float32(eps))
    scale = inv_std * w32[0]
    shift = b32[0] - mean * scale
    new_rm = (1.0 - momentum) * rm32 + momentum * mean
    new_rv = (1.0 - momentum) * rv32 + momentum * unbiased_var

    # Pass 2: elementwise normalize (parallel tiles, lane-dense stores).
    out2dp = _normalize_lane2d(x2dp, scale, shift, x.dtype, tile_bytes, vmem_limit)
    out = out2dp.reshape(-1)[:n].reshape(orig_shape)
    return out, new_rm, new_rv


# ---------------------------------------------------------------------------
# Pure-JAX reference (mirrors the PyTorch forward exactly)
# ---------------------------------------------------------------------------
def tensor_norm_reference(x, weight, bias, running_mean, running_var,
                          *, eps=1e-4, momentum=0.1, training=True):
    x = x.astype(jnp.float32)
    if training:
        mean = jnp.mean(x)
        biased_var = jnp.mean((x - mean) ** 2)
        unbiased_var = biased_var * x.size / max(x.size - 1, 1)
        new_rm = (1 - momentum) * running_mean + momentum * mean
        new_rv = (1 - momentum) * running_var + momentum * unbiased_var
        inv_std = 1.0 / jnp.sqrt(biased_var + eps)
        return (x - mean) * inv_std * weight[0] + bias[0], new_rm, new_rv
    else:
        inv_std = 1.0 / jnp.sqrt(running_var[0] + eps)
        return ((x - running_mean[0]) * inv_std * weight[0] + bias[0],
                running_mean, running_var)


# ---------------------------------------------------------------------------
if __name__ == "__main__":
    key = jax.random.PRNGKey(0)
    x = jax.random.normal(key, (2, 4, 16, 16), dtype=jnp.float32)

    # reset_running_stats(): weight=1, bias=0, running_mean=0, running_var=1.
    weight = jnp.ones((1,), jnp.float32)
    bias = jnp.zeros((1,), jnp.float32)
    running_mean = jnp.zeros((1,), jnp.float32)
    running_var = jnp.ones((1,), jnp.float32)

    # 1) Training forward -- fused resident-x path.
    out, new_rm, new_rv = tensor_norm_forward(
        x, weight, bias, running_mean, running_var, training=True)
    out = jax.block_until_ready(out)
    ref_out, ref_rm, ref_rv = tensor_norm_reference(
        x, weight, bias, running_mean, running_var, training=True)
    assert jnp.allclose(out, ref_out, atol=1e-5, rtol=1e-5)
    assert jnp.allclose(new_rm, ref_rm, atol=1e-6)
    assert jnp.allclose(new_rv, ref_rv, atol=1e-5)

    # 2) Eval forward (uses running stats).
    out_eval, _, _ = tensor_norm_forward(
        x, weight, bias, new_rm, new_rv, training=False)
    out_eval = jax.block_until_ready(out_eval)
    ref_eval, _, _ = tensor_norm_reference(
        x, weight, bias, new_rm, new_rv, training=False)
    assert jnp.allclose(out_eval, ref_eval, atol=1e-5, rtol=1e-5)

    # 3) Training forward -- force the two-pass tiled path (small tiles, 2-way
    #    split) to exercise the partial-stats accumulator and row padding.
    x2 = jax.random.normal(jax.random.PRNGKey(1), (4, 16, 32, 32),
                           dtype=jnp.float32) * 0.5 + 0.25
    out2, rm2, rv2 = tensor_norm_forward(
        x2, weight, bias, running_mean, running_var, training=True,
        max_fused_bytes=0, tile_bytes=64 * 1024)
    out2 = jax.block_until_ready(out2)
    r_out2, r_rm2, r_rv2 = tensor_norm_reference(
        x2, weight, bias, running_mean, running_var, training=True)
    assert jnp.allclose(out2, r_out2, atol=1e-4, rtol=1e-4)
    assert jnp.allclose(rm2, r_rm2, atol=1e-4)
    assert jnp.allclose(rv2, r_rv2, atol=1e-4)

    # 4) Element count not a multiple of 128 -> lane-padding path (fused).
    x3 = jax.random.normal(jax.random.PRNGKey(2), (3, 5, 7, 11),
                           dtype=jnp.float32) + 2.0
    out3, rm3, rv3 = tensor_norm_forward(
        x3, weight, bias, running_mean, running_var, training=True)
    out3 = jax.block_until_ready(out3)
    r_out3, r_rm3, r_rv3 = tensor_norm_reference(
        x3, weight, bias, running_mean, running_var, training=True)
    assert jnp.allclose(out3, r_out3, atol=1e-4, rtol=1e-4)
    assert jnp.allclose(rm3, r_rm3, atol=1e-4)
    assert jnp.allclose(rv3, r_rv3, atol=1e-4)

    print("KERNEL_OK")
</pallas_src>

<mosaic_0001>
module attributes {stable_mosaic.version = 11 : i64} {
  func.func @_fused_train_kernel(%arg0: i32, %arg1: memref<2x1024xf32, #tpu.memory_space<vmem>>, %arg2: memref<1xf32, #tpu.memory_space<smem>>, %arg3: memref<1xf32, #tpu.memory_space<smem>>, %arg4: memref<1xf32, #tpu.memory_space<smem>>, %arg5: memref<1xf32, #tpu.memory_space<smem>>, %arg6: memref<2x1024xf32, #tpu.memory_space<vmem>>, %arg7: memref<1xf32, #tpu.memory_space<smem>>, %arg8: memref<1xf32, #tpu.memory_space<smem>>) attributes {dimension_semantics = [#tpu.dimension_semantics<arbitrary>], iteration_bounds = array<i64: 1>, scalar_prefetch = 0 : i64, scratch_operands = 0 : i64, tpu.core_type = #tpu.core_type<tc>, window_params = [{pipeline_mode = #tpu.pipeline_mode<synchronous>, transform_indices = @transform_0, window_bounds = array<i64: 2, 1024>}, {transform_indices = @transform_1, window_bounds = array<i64: 1>}, {transform_indices = @transform_2, window_bounds = array<i64: 1>}, {transform_indices = @transform_3, window_bounds = array<i64: 1>}, {transform_indices = @transform_4, window_bounds = array<i64: 1>}, {pipeline_mode = #tpu.pipeline_mode<synchronous>, transform_indices = @transform_5, window_bounds = array<i64: 2, 1024>}, {transform_indices = @transform_6, window_bounds = array<i64: 1>}, {transform_indices = @transform_7, window_bounds = array<i64: 1>}]} {
    %c0 = arith.constant 0 : index
    %c0_0 = arith.constant 0 : index
    %0 = vector.load %arg1[%c0, %c0_0] : memref<2x1024xf32, #tpu.memory_space<vmem>>, vector<2x1024xf32>
    %1 = vector.shape_cast %0 : vector<2x1024xf32> to vector<1x2x1024xf32>
    %cst = arith.constant dense<0.000000e+00> : vector<1xf32>
    %2 = vector.multi_reduction <add>, %1, %cst [1, 2] : vector<1x2x1024xf32> to vector<1xf32>
    %3 = vector.shape_cast %2 : vector<1xf32> to vector<1x1x1xf32>
    %4 = vector.extract %3[0, 0, 0] : f32 from vector<1x1x1xf32>
    %cst_1 = arith.constant 4.8828125E-4 : f32
    %5 = arith.mulf %4, %cst_1 : f32
    %6 = vector.broadcast %5 : f32 to vector<2x1024xf32>
    %7 = arith.subf %0, %6 : vector<2x1024xf32>
    %8 = arith.mulf %7, %7 : vector<2x1024xf32>
    %9 = vector.shape_cast %8 : vector<2x1024xf32> to vector<1x2x1024xf32>
    %cst_2 = arith.constant dense<0.000000e+00> : vector<1xf32>
    %10 = vector.multi_reduction <add>, %9, %cst_2 [1, 2] : vector<1x2x1024xf32> to vector<1xf32>
    %11 = vector.shape_cast %10 : vector<1xf32> to vector<1x1x1xf32>
    %12 = vector.extract %11[0, 0, 0] : f32 from vector<1x1x1xf32>
    %cst_3 = arith.constant 0.000000e+00 : f32
    %13 = arith.mulf %cst_3, %5 : f32
    %14 = arith.mulf %13, %5 : f32
    %15 = arith.subf %12, %14 : f32
    %cst_4 = arith.constant 0.000000e+00 : f32
    %16 = arith.maximumf %15, %cst_4 : f32
    %cst_5 = arith.constant 4.8828125E-4 : f32
    %17 = arith.mulf %16, %cst_5 : f32
    %cst_6 = arith.constant 4.88519785E-4 : f32
    %18 = arith.mulf %16, %cst_6 : f32
    %cst_7 = arith.constant 9.99999974E-5 : f32
    %19 = arith.addf %17, %cst_7 : f32
    %20 = math.rsqrt %19 : f32
    %c0_8 = arith.constant 0 : index
    %21 = memref.load %arg2[%c0_8] : memref<1xf32, #tpu.memory_space<smem>>
    %22 = arith.mulf %20, %21 : f32
    %c0_9 = arith.constant 0 : index
    %23 = memref.load %arg3[%c0_9] : memref<1xf32, #tpu.memory_space<smem>>
    %24 = arith.mulf %5, %22 : f32
    %25 = arith.subf %23, %24 : f32
    %26 = vector.broadcast %22 : f32 to vector<2x1024xf32>
    %27 = arith.mulf %0, %26 : vector<2x1024xf32>
    %28 = vector.broadcast %25 : f32 to vector<2x1024xf32>
    %29 = arith.addf %27, %28 : vector<2x1024xf32>
    %c0_10 = arith.constant 0 : index
    %c0_11 = arith.constant 0 : index
    %30 = vector.load %arg6[%c0_10, %c0_11] : memref<2x1024xf32, #tpu.memory_space<vmem>>, vector<2x1024xf32>
    tpu.vector_store %arg6[%c0_10, %c0_11], %29 {strides = array<i32>} : memref<2x1024xf32, #tpu.memory_space<vmem>>, vector<2x1024xf32>,
    %c0_12 = arith.constant 0 : index
    %31 = memref.load %arg4[%c0_12] : memref<1xf32, #tpu.memory_space<smem>>
    %cst_13 = arith.constant 0.899999976 : f32
    %32 = arith.mulf %cst_13, %31 : f32
    %cst_14 = arith.constant 1.000000e-01 : f32
    %33 = arith.mulf %cst_14, %5 : f32
    %34 = arith.addf %32, %33 : f32
    %c0_15 = arith.constant 0 : index
    %35 = memref.load %arg7[%c0_15] : memref<1xf32, #tpu.memory_space<smem>>
    memref.store %34, %arg7[%c0_15] : memref<1xf32, #tpu.memory_space<smem>>
    %c0_16 = arith.constant 0 : index
    %36 = memref.load %arg5[%c0_16] : memref<1xf32, #tpu.memory_space<smem>>
    %cst_17 = arith.constant 0.899999976 : f32
    %37 = arith.mulf %cst_17, %36 : f32
    %cst_18 = arith.constant 1.000000e-01 : f32
    %38 = arith.mulf %cst_18, %18 : f32
    %39 = arith.addf %37, %38 : f32
    %c0_19 = arith.constant 0 : index
    %40 = memref.load %arg8[%c0_19] : memref<1xf32, #tpu.memory_space<smem>>
    memref.store %39, %arg8[%c0_19] : memref<1xf32, #tpu.memory_space<smem>>
    return
  }
  func.func @transform_0(%arg0: i32) -> (i32, i32) {
    %c0_i32 = arith.constant 0 : i32
    %c0_i32_0 = arith.constant 0 : i32
    %c0_i32_1 = arith.constant 0 : i32
    return %c0_i32, %c0_i32_0 : i32, i32
  }
  func.func @transform_1(%arg0: i32) -> i32 {
    %c0_i32 = arith.constant 0 : i32
    %c0_i32_0 = arith.constant 0 : i32
    return %c0_i32 : i32
  }
  func.func @transform_2(%arg0: i32) -> i32 {
    %c0_i32 = arith.constant 0 : i32
    %c0_i32_0 = arith.constant 0 : i32
    return %c0_i32 : i32
  }
  func.func @transform_3(%arg0: i32) -> i32 {
    %c0_i32 = arith.constant 0 : i32
    %c0_i32_0 = arith.constant 0 : i32
    return %c0_i32 : i32
  }
  func.func @transform_4(%arg0: i32) -> i32 {
    %c0_i32 = arith.constant 0 : i32
    %c0_i32_0 = arith.constant 0 : i32
    return %c0_i32 : i32
  }
  func.func @transform_5(%arg0: i32) -> (i32, i32) {
    %c0_i32 = arith.constant 0 : i32
    %c0_i32_0 = arith.constant 0 : i32
    %c0_i32_1 = arith.constant 0 : i32
    return %c0_i32, %c0_i32_0 : i32, i32
  }
  func.func @transform_6(%arg0: i32) -> i32 {
    %c0_i32 = arith.constant 0 : i32
    %c0_i32_0 = arith.constant 0 : i32
    return %c0_i32 : i32
  }
  func.func @transform_7(%arg0: i32) -> i32 {
    %c0_i32 = arith.constant 0 : i32
    %c0_i32_0 = arith.constant 0 : i32
    return %c0_i32 : i32
  }
}

</mosaic_0001>

<bundles_post_ra>
// kernel: tpu_custom_call.1
= control target key start
LH: loop header
LB: loop body
LE: loop exit
PB: predicated region body
PF: predicated region fallthrough
CT: control target
= control target key end

     0   :  { %17 = vsyncpa [#allocation7], 0  ;;  %s449_s0 = inlined_call_operand.hbm [shape: f32[2,1024], index: 0, kind: input, shape index: {}]   ;;  %s450_s1 = inlined_call_operand.<no memory space> [shape: f32[1], index: 1, kind: input, shape index: {}]   ;;  %s451_s2 = inlined_call_operand.<no memory space> [shape: f32[1], index: 2, kind: input, shape index: {}]   ;;  %s452_s3 = inlined_call_operand.<no memory space> [shape: f32[1], index: 3, kind: input, shape index: {}]   ;;  %s453_s4 = inlined_call_operand.<no memory space> [shape: f32[1], index: 4, kind: input, shape index: {}]   ;;  %s454_s5 = inlined_call_operand.hbm [shape: f32[2,1024], index: 5, kind: output, shape index: {0}]   ;;  %s455_s6 = inlined_call_operand.hbm [shape: f32[1], index: 6, kind: output, shape index: {1}]   ;;  %s456_s7 = inlined_call_operand.hbm [shape: f32[1], index: 7, kind: output, shape index: {2}]  }
   0x1   :  { %18 = vsyncpa [#allocation8], 0 }
   0x2   :  { %19 = vsyncpa [#allocation9], 0 }
   0x3   :  { %20 = vsyncpa [#allocation13], 0  ;;  %s342_s24 = smov [#allocation6]  }
   0x4   :  { %s27_s25 = sshll.u32 %s342_s24, 4  ;;  %s28_s25 = int_to_ptr.vmem [resolvable:$true] %s27_s25 }
   0x5   :  { %s286_s26 = scalar_lea.vmem %s28_s25, 256  ;;  %p291_p1 = scmp.lt.s32.totalorder %s28_s25, %s28_s25 }
   0x6   :  { %p287_p0 = scmp.ne.s32.totalorder %s28_s25, %s286_s26  ;;  %p292_p2 = scmp.lt.s32.totalorder %s286_s26, %s286_s26 }
   0x8   :  { %p293_p3 = por %p292_p2, %p291_p1 }
   0xa   :  { %p294_p4 = pnand %p293_p3, %p287_p0 }
   0xc   :  { %297 = shalt.err (!%p294_p4)
}
   0xd   :  { %30 = dma.hbm_to_vmem [thread:$0]  %s449_s0, 256, %s28_s25, [#allocation7]  }
   0xe   :  { %334 = dma.done.wait [#allocation7], 256  }
   0xf   :  { %335 = vsyncadd [#allocation7], 4294967040  ;;  %v50_v0 = vlaneseq  ;;  %v343_v1 = vmov 1983009808   ;;  %v391_v6 = vld [vmem:[#allocation6] sm:$0xff]  ;;  %v393_v7 = vld [vmem:[#allocation6 + $0x8] sm:$0xff] }
  0x10   :  { %v48_v2 = vunpack.c.l.s4 %v343_v1  ;;  %v46_v8 = vcombine.high %v391_v6, %v391_v6  ;;  %vm88_vm0 = vcmask 1041408   ;;  %v63_v12 = vcombine.high %v393_v7, %v393_v7  ;;  %s211_s9 = smul.f32 0.9, %s452_s3  ;;  %s344_s3 = smov [#allocation11]  }
  0x11   :  { %v51_v3 = vshrl.u32 %v50_v0, 7  ;;  %s345_s18 = smov 0.0   ;;  %s217_s22 = smul.f32 0.9, %s453_s4 }
  0x12   :  { %v49_v4 = vunpack.c.0.s8 %v48_v2  ;;  %s347_s13 = smov [#allocation10]  }
  0x14   :  { %v52_v5 = vsub.s32 %v49_v4, %v51_v3 }
  0x16   :  { %v53_v9 = vrot.slane %v391_v6, %v52_v5  ;;  %v60_v10 = vrot.slane %v46_v8, %v52_v5  ;;  %v70_v13 = vrot.slane %v393_v7, %v52_v5  ;;  %v77_v19 = vrot.slane %v63_v12, %v52_v5 }
  0x18   :  { %v61_v11 = vcombine.high %v53_v9, %v53_v9  ;;  %v89_v14 = vsel %vm88_vm0, %v53_v9, 0.0  ;;  %v62_v15 = vcombine.high %v60_v10, %v60_v10  ;;  %v92_v17 = vsel %vm88_vm0, %v60_v10, 0.0 }
  0x19   :  { %v78_v20 = vcombine.high %v70_v13, %v70_v13  ;;  %v96_v23 = vsel %vm88_vm0, %v70_v13, 0.0  ;;  %v79_v25 = vcombine.high %v77_v19, %v77_v19  ;;  %v100_v28 = vsel %vm88_vm0, %v77_v19, 0.0 }
  0x1a   :  { %v90_v16 = vsel %vm88_vm0, %v61_v11, 0.0  ;;  %v94_v21 = vsel %vm88_vm0, %v62_v15, 0.0 }
  0x1b   :  { %v91_v18 = vadd.f32 %v90_v16, %v89_v14  ;;  %v98_v26 = vsel %vm88_vm0, %v78_v20, 0.0  ;;  %v102_v30 = vsel %vm88_vm0, %v79_v25, 0.0 }
  0x1d   :  { %v93_v22 = vadd.f32 %v92_v17, %v91_v18 }
  0x1f   :  { %v95_v24 = vadd.f32 %v94_v21, %v93_v22 }
  0x21   :  { %v97_v27 = vadd.f32 %v96_v23, %v95_v24 }
  0x23   :  { %v99_v29 = vadd.f32 %v98_v26, %v97_v27 }
  0x25   :  { %v101_v31 = vadd.f32 %v100_v28, %v99_v29 }
  0x27   :  { %v103_v32 = vadd.f32 %v102_v30, %v101_v31 }
  0x29   :  { %104 = vadd.xlane.f32.xlu0 %v103_v32 }
  0xb2   :  { %v105_v33 = vpop.xlane.xlu0 %104 }
  0xb3   :  { %v106_v34 = vrot.slane %v105_v33, 4 }
  0xb5   :  { %v107_v35 = vadd.f32 %v106_v34, %v105_v33 }
  0xb7   :  { %v108_v36 = vrot.slane %v107_v35, 2 }
  0xb9   :  { %v109_v37 = vadd.f32 %v108_v36, %v107_v35 }
  0xbb   :  { %v110_v38 = vrot.slane %v109_v37, 1 }
  0xbd   :  { %v111_v39 = vadd.f32 %v110_v38, %v109_v37 }
  0xbf   :  { %262 = vpush %v111_v39 }
  0xf0   :  { %s263_s0 = spop %262 }
  0xf1   :  { %s409_s29 = smul.f32 0.00048828125, %s263_s0 }
  0xf3   :  { %v114_v40 = vstv %s409_s29  ;;  %s212_s10 = smul.f32 0.1, %s409_s29 }
  0xf4   :  { %v115_v41 = vsub.f32 %v391_v6, %v114_v40  ;;  %v116_v42 = vsub.f32 %v393_v7, %v114_v40  ;;  %s187_s14 = smul.f32 0.0, %s409_s29 }
  0xf5   :  { %s213_s11 = sadd.f32 %s212_s10, %s211_s9 }
  0xf6   :  { %v117_v43 = vmul.f32 %v115_v41, %v115_v41  ;;  %v118_v44 = vmul.f32 %v116_v42, %v116_v42  ;;  %s188_s15 = smul.f32 %s187_s14, %s409_s29  ;;  %s228_s14 = sshll.u32 %s347_s13, 4  ;;  %s229_s14 = int_to_ptr.vmem [resolvable:$true] %s228_s14 }
  0xf7   :  { %215 = sst [smem:[#allocation11]] %s213_s11  ;;  %p319_p6 = scmp.lt.s32.totalorder %s229_s14, %s229_s14 }
  0xf8   :  { %v121_v45 = vcombine.high %v117_v43, %v117_v43  ;;  %v128_v46 = vrot.slane %v117_v43, %v52_v5  ;;  %v138_v49 = vcombine.high %v118_v44, %v118_v44  ;;  %v145_v51 = vrot.slane %v118_v44, %v52_v5  ;;  %239 = dma.smem_to_hbm %s344_s3, 16, %s455_s6, [#allocation9]  }
  0xf9   :  { %s346_s6 = smov [#allocation12]  }
  0xfa   :  { %v135_v47 = vrot.slane %v121_v45, %v52_v5  ;;  %v136_v48 = vcombine.high %v128_v46, %v128_v46  ;;  %v163_v52 = vsel %vm88_vm0, %v128_v46, 0.0  ;;  %v152_v57 = vrot.slane %v138_v49, %v52_v5 }
  0xfb   :  { %v153_v58 = vcombine.high %v145_v51, %v145_v51  ;;  %v170_v61 = vsel %vm88_vm0, %v145_v51, 0.0 }
  0xfc   :  { %v137_v50 = vcombine.high %v135_v47, %v135_v47  ;;  %v164_v53 = vsel %vm88_vm0, %v136_v48, 0.0  ;;  %v166_v55 = vsel %vm88_vm0, %v135_v47, 0.0  ;;  %v154_v63 = vcombine.high %v152_v57, %v152_v57 }
  0xfd   :  { %v165_v54 = vadd.f32 %v164_v53, %v163_v52  ;;  %v172_v0 = vsel %vm88_vm0, %v153_v58, 0.0  ;;  %v174_v2 = vsel %vm88_vm0, %v152_v57, 0.0 }
  0xfe   :  { %v168_v59 = vsel %vm88_vm0, %v137_v50, 0.0  ;;  %v176_v4 = vsel %vm88_vm0, %v154_v63, 0.0 }
  0xff   :  { %v167_v56 = vadd.f32 %v166_v55, %v165_v54 }
 0x101   :  { %v169_v60 = vadd.f32 %v168_v59, %v167_v56 }
 0x103   :  { %v171_v62 = vadd.f32 %v170_v61, %v169_v60 }
 0x105   :  { %v173_v1 = vadd.f32 %v172_v0, %v171_v62 }
 0x107   :  { %v175_v3 = vadd.f32 %v174_v2, %v173_v1 }
 0x109   :  { %v177_v8 = vadd.f32 %v176_v4, %v175_v3 }
 0x10b   :  { %178 = vadd.xlane.f32.xlu0 %v177_v8 }
 0x194   :  { %v179_v5 = vpop.xlane.xlu0 %178 }
 0x195   :  { %v180_v9 = vrot.slane %v179_v5, 4 }
 0x197   :  { %v181_v10 = vadd.f32 %v180_v9, %v179_v5 }
 0x199   :  { %v182_v11 = vrot.slane %v181_v10, 2 }
 0x19b   :  { %v183_v12 = vadd.f32 %v182_v11, %v181_v10 }
 0x19d   :  { %v184_v13 = vrot.slane %v183_v12, 1 }
 0x19f   :  { %v185_v14 = vadd.f32 %v184_v13, %v183_v12 }
 0x1a1   :  { %264 = vpush %v185_v14 }
 0x1d2   :  { %s265_s16 = spop %264 }
 0x1d3   :  { %s189_s17 = ssub.f32 %s265_s16, %s188_s15 }
 0x1d5   :  { %s190_s19 = smax.f32 %s345_s18, %s189_s17 }
 0x1d6   :  { %s191_s23 = smul.f32 0.00048828125, %s190_s19 }
 0x1d7   :  { %s192_s24 = smul.f32 0.0004885198, %s190_s19 }
 0x1d8   :  { %s193_s25 = sadd.f32 0.0001, %s191_s23 }
 0x1d9   :  { %s218_s26 = smul.f32 0.1, %s192_s24 }
 0x1da   :  { %v194_v15 = vstv %s193_s25 }
 0x1db   :  { %276 = vrsqrt.f32 %v194_v15  ;;  %s219_s27 = sadd.f32 %s218_s26, %s217_s22 }
 0x1dd   :  { %221 = sst [smem:[#allocation12]] %s219_s27 }
 0x1de   :  { %247 = dma.smem_to_hbm %s346_s6, 16, %s456_s7, [#allocation13]  }
 0x1df   :  { %s314_s7 = scalar_lea.vmem %s229_s14, 256 }
 0x1e0   :  { %p315_p5 = scmp.ne.s32.totalorder %s229_s14, %s314_s7  ;;  %p320_p7 = scmp.lt.s32.totalorder %s314_s7, %s314_s7 }
 0x1e2   :  { %p321_p8 = por %p320_p7, %p319_p6 }
 0x1e4   :  { %p322_p9 = pnand %p321_p8, %p315_p5 }
 0x1e8   :  { %v277_v16 = vpop.eup %276 }
 0x1e9   :  { %266 = vpush %v277_v16 }
 0x21a   :  { %s267_s30 = spop %266 }
 0x21b   :  { %s198_s4 = smul.f32 %s267_s30, %s450_s1 }
 0x21d   :  { %s200_s10 = smul.f32 %s198_s4, %s409_s29  ;;  %v202_v17 = vstv %s198_s4 }
 0x21e   :  { %v203_v18 = vmul.f32 %v202_v17, %v391_v6  ;;  %v204_v19 = vmul.f32 %v202_v17, %v393_v7 }
 0x21f   :  { %s201_s12 = ssub.f32 %s451_s2, %s200_s10 }
 0x221   :  { %v205_v20 = vstv %s201_s12 }
 0x222   :  { %v206_v21 = vadd.f32 %v205_v20, %v203_v18  ;;  %v207_v22 = vadd.f32 %v205_v20, %v204_v19 }
 0x224   :  { %208 = vst [vmem:[#allocation10] sm:$0xff] %v206_v21  ;;  %209 = vst [vmem:[#allocation10 + $0x8] sm:$0xff] %v207_v22 }
 0x225   :  { %325 = shalt.err (!%p322_p9)
}
 0x226   :  { %231 = dma.vmem_to_hbm [thread:$0]  %s229_s14, 256, %s454_s5, [#allocation8]  }
 0x227   :  { %336 = dma.done.wait [#allocation8], 256  }
 0x228   :  { %337 = vsyncadd [#allocation8], 4294967040 }
 0x229   :  { %338 = dma.done.wait [#allocation9], 16  }
 0x22a   :  { %339 = vsyncadd [#allocation9], 4294967280 }
 0x22b   :  { %340 = dma.done.wait [#allocation13], 16  }
 0x22c   :  { %341 = vsyncadd [#allocation13], 4294967280 }
 0x22d   :  { %257 = sfence }
 0x22e   :  { %258 = vsyncpa [#allocation7], 1 }
 0x22f   :  { %259 = vsyncpa [#allocation8], 1 }
 0x230   :  { %260 = vsyncpa [#allocation9], 1 }
 0x231   :  { %261 = vsyncpa [#allocation13], 1 }

</bundles_post_ra>
